<compile_context>
chip_gen: v7x
topology: tpu7x:2x2x1
jax: 0.10.0
libtpu: 0.0.40
codegen_flags: <defaults>
</compile_context>

<pallas_src>
import functools
import math

import numpy as np
import jax
import jax.numpy as jnp
from jax.experimental import pallas as pl
from jax.experimental.pallas import tpu as pltpu

_LANES = 128


def _is_pow2(v: float) -> bool:
    if not (v > 0.0 and math.isfinite(v)):
        return False
    m, _ = math.frexp(v)
    return m == 0.5


def _phase_encode_kernel(x_ref, r_ref, mask_ref, scale_ref, o_ref, *, max_val):
    # x_ref:     (tile_g, 128)    f32      raw inputs, lane-dense over elements
    # r_ref:     (128, tile_l)    bf16/f32 0/1 replication matrix (lane l <- element l // T)
    # mask_ref:  (1, tile_l)      int32    per-lane bit mask (period T along lanes)
    # scale_ref: (1, tile_l)      f32      prescale * repeat_scale**(t // n_bits) per lane
    # o_ref:     (tile_g, tile_l) out      final layout: lane l = e*T + t (dense stores)
    x_int = (x_ref[...] * max_val).astype(jnp.int32)          # trunc toward zero == torch .int()
    x_mat = x_int.astype(jnp.float32).astype(r_ref.dtype)      # exact (<=255 for default n_bits)
    # MXU replication: x_rep[g, l] = x_int[g, l // T]  (single nonzero term per dot -> exact)
    x_rep = jnp.dot(x_mat, r_ref[...], preferred_element_type=jnp.float32)
    bits = jnp.bitwise_and(x_rep.astype(jnp.int32), mask_ref[...])
    o_ref[...] = (bits.astype(jnp.float32) * scale_ref[...]).astype(o_ref.dtype)


def phase_encoding(inputs: jax.Array,
                   timesteps: int,
                   n_bits: int = 8,
                   prescale: float = 1.0 / 128,
                   repeat_scale: float = 1.0 / 256,
                   out_dtype=None,
                   vmem_budget_bytes: int = 16 * 1024 * 1024,
                   max_t_chunk: int = 32) -> jax.Array:
    """JAX/Pallas equivalent of PhaseEncoding.forward."""
    in_shape = inputs.shape
    T = int(timesteps)

    if out_dtype is None:
        # bf16 is bit-exact when every output value is (bit) * pow2 scales; else keep f32.
        out_dtype = jnp.bfloat16 if (_is_pow2(prescale) and _is_pow2(repeat_scale)) else jnp.float32
    # bf16 MXU operands are exact for integers <= 256, i.e. n_bits <= 8 (the default).
    r_dtype = jnp.bfloat16 if n_bits <= 8 else jnp.float32

    # Flatten and pad M up to a multiple of 8*128 so G (and every row-block) is sublane-aligned.
    x = inputs.astype(jnp.float32).reshape(-1)
    M = x.shape[0]
    M_pad = ((M + 8 * _LANES - 1) // (8 * _LANES)) * (8 * _LANES)
    if M_pad != M:
        x = jnp.pad(x, (0, M_pad - M))
    G = M_pad // _LANES
    x2 = x.reshape(G, _LANES)                                  # lane-dense input slab

    # ---- static per-lane glue: lane l <-> (element e = l // T, timestep t = l % T) ----
    L = T * _LANES
    n_repeats = int(np.ceil(T / n_bits))
    bit_array = (1 << np.arange(n_bits)[::-1]).astype(np.int32)
    rep_scales = []
    cur = np.float32(prescale)                                 # mirrors the PyTorch repeat loop
    for _ in range(n_repeats):
        rep_scales.append(cur)
        cur = np.float32(cur * np.float32(repeat_scale))
    rep_scales = np.asarray(rep_scales, np.float32)

    t_of_lane = np.arange(L) % T
    e_of_lane = np.arange(L) // T
    mask_lane = bit_array[t_of_lane % n_bits][None, :].astype(np.int32)          # (1, L)
    scale_lane = rep_scales[t_of_lane // n_bits][None, :].astype(np.float32)     # (1, L)
    r_np = (e_of_lane[None, :] == np.arange(_LANES)[:, None]).astype(np.float32)  # (128, L)

    mask_j = jnp.asarray(mask_lane)
    scale_j = jnp.asarray(scale_lane)
    r_j = jnp.asarray(r_np, dtype=r_dtype)

    max_val = float(2 ** n_bits - 1)

    # ---- tiling: lane axis in whole-timestep chunks (exact divisor -> no ragged edge) ----
    t_chunk = 1
    for d in range(1, min(T, int(max_t_chunk)) + 1):
        if T % d == 0:
            t_chunk = d
    tile_l = t_chunk * _LANES

    out_is = jnp.dtype(out_dtype).itemsize
    r_is = jnp.dtype(r_dtype).itemsize
    # Double-buffered VMEM footprint: constant operands (R, mask, scale; (1,L) pads to 8 sublanes)
    # plus per-row (x, out) bytes.
    fixed_bytes = 2 * (_LANES * tile_l * r_is + 8 * tile_l * 4 + 8 * tile_l * 4)
    per_g_bytes = 2 * (_LANES * 4 + tile_l * out_is)
    avail = max(vmem_budget_bytes - fixed_bytes, 8 * per_g_bytes)
    tile_g_cap = max(8, (avail // per_g_bytes) // 8 * 8)
    tile_g = G if G <= tile_g_cap else int(tile_g_cap)

    # Lane-chunk axis outer (R/mask/scale fetched once per chunk), row-chunk axis inner.
    grid = (pl.cdiv(L, tile_l), pl.cdiv(G, tile_g))

    kernel = functools.partial(_phase_encode_kernel, max_val=max_val)
    out = pl.pallas_call(
        kernel,
        out_shape=jax.ShapeDtypeStruct((G, L), out_dtype),
        grid_spec=pltpu.PrefetchScalarGridSpec(
            num_scalar_prefetch=0,
            grid=grid,
            in_specs=[
                pl.BlockSpec((tile_g, _LANES), lambda j, i: (i, 0)),
                pl.BlockSpec((_LANES, tile_l), lambda j, i: (0, j)),
                pl.BlockSpec((1, tile_l), lambda j, i: (0, j)),
                pl.BlockSpec((1, tile_l), lambda j, i: (0, j)),
            ],
            out_specs=pl.BlockSpec((tile_g, tile_l), lambda j, i: (i, j)),
        ),
        compiler_params=pltpu.CompilerParams(
            # Both grid axes are fully independent.
            # TODO(synk): on v7x, profile whether both TensorCores are active; if not,
            # switch the row axis to pltpu.CORE_PARALLEL (kept "parallel" for portability).
            dimension_semantics=("parallel", "parallel"),
            vmem_limit_bytes=32 * 1024 * 1024,
        ),
    )(x2, r_j, mask_j, scale_j)

    # (G, 128*T) row-major == (M_pad, T) row-major -> free reshape, no transpose, no copy.
    out = out.reshape(M_pad, T)
    if M_pad != M:
        out = out[:M]
    return out.reshape(*in_shape, T)


def _reference(inputs, timesteps, n_bits=8, prescale=1.0 / 128, repeat_scale=1.0 / 256):
    """Pure-numpy reference mirroring the PyTorch forward."""
    x = np.asarray(inputs, dtype=np.float32)
    xi = (x * (2 ** n_bits - 1)).astype(np.int32)
    bit_array = (1 << np.arange(n_bits)[::-1]).astype(np.int32)
    enc = np.bitwise_and(xi[..., None], bit_array).astype(np.float32) * np.float32(prescale)
    n_repeats = int(np.ceil(timesteps / n_bits))
    parts, cur = [], enc
    for _ in range(n_repeats):
        parts.append(cur)
        cur = cur * np.float32(repeat_scale)
    ret = np.concatenate(parts, axis=-1)
    return ret[..., :timesteps]


if __name__ == "__main__":
    key = jax.random.PRNGKey(0)
    B, C, H, W = 2, 4, 16, 16
    timesteps = 12  # exercises n_repeats = 2 and the trailing slice
    x = jax.random.uniform(key, (B, C, H, W), dtype=jnp.float32)  # values in [0, 1)

    out = phase_encoding(x, timesteps=timesteps)
    out = jax.block_until_ready(out)

    ref = _reference(np.asarray(x), timesteps=timesteps)
    assert out.shape == (B, C, H, W, timesteps), out.shape
    np.testing.assert_allclose(np.asarray(out.astype(jnp.float32)), ref, rtol=1e-6, atol=1e-6)

    print("KERNEL_OK")
</pallas_src>

<mosaic_0001>
module attributes {stable_mosaic.version = 11 : i64} {
  func.func @_phase_encode_kernel(%arg0: i32, %arg1: i32, %arg2: memref<16x128xf32, #tpu.memory_space<vmem>>, %arg3: memref<128x1536xbf16, #tpu.memory_space<vmem>>, %arg4: memref<1x1536xi32, #tpu.memory_space<vmem>>, %arg5: memref<1x1536xf32, #tpu.memory_space<vmem>>, %arg6: memref<16x1536xbf16, #tpu.memory_space<vmem>>) attributes {dimension_semantics = [#tpu.dimension_semantics<parallel>, #tpu.dimension_semantics<parallel>], iteration_bounds = array<i64: 1, 1>, scalar_prefetch = 0 : i64, scratch_operands = 0 : i64, tpu.core_type = #tpu.core_type<tc>, window_params = [{transform_indices = @transform_0, window_bounds = array<i64: 16, 128>}, {transform_indices = @transform_1, window_bounds = array<i64: 128, 1536>}, {transform_indices = @transform_2, window_bounds = array<i64: 1, 1536>}, {transform_indices = @transform_3, window_bounds = array<i64: 1, 1536>}, {transform_indices = @transform_4, window_bounds = array<i64: 16, 1536>}]} {
    %c0 = arith.constant 0 : index
    %c0_0 = arith.constant 0 : index
    %0 = vector.load %arg2[%c0, %c0_0] : memref<16x128xf32, #tpu.memory_space<vmem>>, vector<16x128xf32>
    %cst = arith.constant 2.550000e+02 : f32
    %1 = vector.broadcast %cst : f32 to vector<16x128xf32>
    %2 = arith.mulf %0, %1 : vector<16x128xf32>
    %3 = arith.fptosi %2 : vector<16x128xf32> to vector<16x128xi32>
    %4 = arith.sitofp %3 : vector<16x128xi32> to vector<16x128xf32>
    %5 = arith.truncf %4 : vector<16x128xf32> to vector<16x128xbf16>
    %c0_1 = arith.constant 0 : index
    %c0_2 = arith.constant 0 : index
    %6 = vector.load %arg3[%c0_1, %c0_2] : memref<128x1536xbf16, #tpu.memory_space<vmem>>, vector<128x1536xbf16>
    %cst_3 = arith.constant dense<0.000000e+00> : vector<16x1536xf32>
    %7 = tpu.matmul %5, %6, %cst_3 {dimension_numbers = #tpu.dot_dimension_numbers<[1], [0], [0], [1], [0, 0, 1, 1], [], []>} : vector<16x128xbf16>, vector<128x1536xbf16>, vector<16x1536xf32> -> vector<16x1536xf32>
    %8 = arith.fptosi %7 : vector<16x1536xf32> to vector<16x1536xi32>
    %c0_4 = arith.constant 0 : index
    %c0_5 = arith.constant 0 : index
    %9 = vector.load %arg4[%c0_4, %c0_5] : memref<1x1536xi32, #tpu.memory_space<vmem>>, vector<1x1536xi32>
    %10 = vector.broadcast %9 : vector<1x1536xi32> to vector<16x1536xi32>
    %11 = arith.andi %8, %10 : vector<16x1536xi32>
    %12 = arith.sitofp %11 : vector<16x1536xi32> to vector<16x1536xf32>
    %c0_6 = arith.constant 0 : index
    %c0_7 = arith.constant 0 : index
    %13 = vector.load %arg5[%c0_6, %c0_7] : memref<1x1536xf32, #tpu.memory_space<vmem>>, vector<1x1536xf32>
    %14 = vector.broadcast %13 : vector<1x1536xf32> to vector<16x1536xf32>
    %15 = arith.mulf %12, %14 : vector<16x1536xf32>
    %16 = arith.truncf %15 : vector<16x1536xf32> to vector<16x1536xbf16>
    %c0_8 = arith.constant 0 : index
    %c0_9 = arith.constant 0 : index
    %17 = vector.load %arg6[%c0_8, %c0_9] : memref<16x1536xbf16, #tpu.memory_space<vmem>>, vector<16x1536xbf16>
    tpu.vector_store %arg6[%c0_8, %c0_9], %16 {strides = array<i32>} : memref<16x1536xbf16, #tpu.memory_space<vmem>>, vector<16x1536xbf16>,
    return
  }
  func.func @transform_0(%arg0: i32, %arg1: i32) -> (i32, i32) {
    %c0_i32 = arith.constant 0 : i32
    %c0_i32_0 = arith.constant 0 : i32
    return %arg1, %c0_i32 : i32, i32
  }
  func.func @transform_1(%arg0: i32, %arg1: i32) -> (i32, i32) {
    %c0_i32 = arith.constant 0 : i32
    %c0_i32_0 = arith.constant 0 : i32
    return %c0_i32, %arg0 : i32, i32
  }
  func.func @transform_2(%arg0: i32, %arg1: i32) -> (i32, i32) {
    %c0_i32 = arith.constant 0 : i32
    %c0_i32_0 = arith.constant 0 : i32
    return %c0_i32, %arg0 : i32, i32
  }
  func.func @transform_3(%arg0: i32, %arg1: i32) -> (i32, i32) {
    %c0_i32 = arith.constant 0 : i32
    %c0_i32_0 = arith.constant 0 : i32
    return %c0_i32, %arg0 : i32, i32
  }
  func.func @transform_4(%arg0: i32, %arg1: i32) -> (i32, i32) {
    %c0_i32 = arith.constant 0 : i32
    return %arg1, %arg0 : i32, i32
  }
}

</mosaic_0001>

<bundles_post_ra>
// kernel: tpu_custom_call.1
= control target key start
LH: loop header
LB: loop body
LE: loop exit
PB: predicated region body
PF: predicated region fallthrough
CT: control target
= control target key end

     0   :  { %9 = vsyncpa [#allocation3], 0  ;;  %s1839_s0 = inlined_call_operand.hbm [shape: f32[16,128], index: 0, kind: input, shape index: {}]   ;;  %s1840_s1 = inlined_call_operand.hbm [shape: bf16[128,1536], index: 1, kind: input, shape index: {}]   ;;  %s1841_s2 = inlined_call_operand.hbm [shape: s32[1,1536], index: 2, kind: input, shape index: {}]   ;;  %s1842_s3 = inlined_call_operand.hbm [shape: f32[1,1536], index: 3, kind: input, shape index: {}]   ;;  %s1843_s4 = inlined_call_operand.hbm [shape: bf16[16,1536], index: 4, kind: output, shape index: {}]  }
   0x1   :  { %10 = vsyncpa [#allocation6], 0 }
   0x2   :  { %11 = vsyncpa [#allocation9], 0 }
   0x3   :  { %12 = vsyncpa [#allocation4], 0  ;;  %s1670_s15 = smov [#allocation5]   ;;  %s1552_s19 = scalar_lea.hbm %s1840_s1, 12288 }
   0x4   :  { %s30_s16 = sshll.u32 %s1670_s15, 4  ;;  %p1553_p0 = scmp.ne.s32.totalorder %s1840_s1, %s1552_s19  ;;  %s31_s16 = int_to_ptr.vmem [resolvable:$true] %s30_s16 }
   0x5   :  { %p1556_p1 = scmp.lt.u32.totalorder %s1552_s19, %s1840_s1 }
   0x7   :  { %p1558_p2 = pnand %p1556_p1, %p1553_p0 }
   0x9   :  { %1561 = shalt.err (!%p1558_p2)
}
   0xa   :  { %s1562_s24 = scalar_lea.vmem %s31_s16, 12288  ;;  %p1567_p4 = scmp.lt.s32.totalorder %s31_s16, %s31_s16 }
   0xb   :  { %p1563_p3 = scmp.ne.s32.totalorder %s31_s16, %s1562_s24  ;;  %p1568_p5 = scmp.lt.s32.totalorder %s1562_s24, %s1562_s24 }
   0xd   :  { %p1569_p6 = por %p1568_p5, %p1567_p4 }
   0xf   :  { %p1570_p7 = pnand %p1569_p6, %p1563_p3 }
  0x11   :  { %1573 = shalt.err (!%p1570_p7)
}
  0x12   :  { %s1671_s25 = smov 768   ;;  %s1672_s26 = smov 48  }
  0x13   :  { %36 = dma.hbm_to_vmem [thread:$0]  %s1840_s1, 12288, %s31_s16, [#allocation6], %s1671_s25, %s1671_s25, %s1672_s26  }
  0x14   :  { %s1673_s29 = smov [#allocation2]   ;;  %s1574_s7 = scalar_lea.hbm %s1839_s0, 256 }
  0x15   :  { %s18_s30 = sshll.u32 %s1673_s29, 4  ;;  %p1575_p8 = scmp.ne.s32.totalorder %s1839_s0, %s1574_s7  ;;  %s19_s30 = int_to_ptr.vmem [resolvable:$true] %s18_s30 }
  0x16   :  { %p1578_p9 = scmp.lt.u32.totalorder %s1574_s7, %s1839_s0 }
  0x18   :  { %p1580_p10 = pnand %p1578_p9, %p1575_p8 }
  0x1a   :  { %1583 = shalt.err (!%p1580_p10)
}
  0x1b   :  { %s1584_s12 = scalar_lea.vmem %s19_s30, 256  ;;  %p1589_p12 = scmp.lt.s32.totalorder %s19_s30, %s19_s30 }
  0x1c   :  { %p1585_p11 = scmp.ne.s32.totalorder %s19_s30, %s1584_s12  ;;  %p1590_p13 = scmp.lt.s32.totalorder %s1584_s12, %s1584_s12 }
  0x1e   :  { %p1591_p0 = por %p1590_p13, %p1589_p12 }
  0x20   :  { %p1592_p1 = pnand %p1591_p0, %p1585_p11 }
  0x22   :  { %1595 = shalt.err (!%p1592_p1)
}
  0x23   :  { %s1674_s1 = smov 128   ;;  %s1675_s13 = smov 8  }
  0x24   :  { %24 = dma.hbm_to_vmem [thread:$0]  %s1839_s0, 256, %s19_s30, [#allocation3], %s1674_s1, %s1674_s1, %s1675_s13  }
  0x25   :  { %s1676_s16 = smov [#allocation7]   ;;  %s1677_s18 = smov [#allocation8]  }
  0x26   :  { %s43_s17 = sshll.u32 %s1676_s16, 4  ;;  %s53_s19 = sshll.u32 %s1677_s18, 4  ;;  %s44_s17 = int_to_ptr.vmem [resolvable:$true] %s43_s17  ;;  %s54_s19 = int_to_ptr.vmem [resolvable:$true] %s53_s19 }
  0x27   :  { %s1596_s22 = scalar_lea.hbm %s1841_s2, 192 }
  0x28   :  { %p1597_p2 = scmp.ne.s32.totalorder %s1841_s2, %s1596_s22  ;;  %p1600_p3 = scmp.lt.u32.totalorder %s1596_s22, %s1841_s2 }
  0x2a   :  { %p1602_p4 = pnand %p1600_p3, %p1597_p2 }
  0x2c   :  { %1605 = shalt.err (!%p1602_p4)
}
  0x2d   :  { %s1606_s0 = scalar_lea.vmem %s44_s17, 192  ;;  %p1611_p6 = scmp.lt.s32.totalorder %s44_s17, %s44_s17 }
  0x2e   :  { %p1607_p5 = scmp.ne.s32.totalorder %s44_s17, %s1606_s0  ;;  %p1612_p7 = scmp.lt.s32.totalorder %s1606_s0, %s1606_s0 }
  0x30   :  { %p1613_p8 = por %p1612_p7, %p1611_p6 }
  0x32   :  { %p1614_p9 = pnand %p1613_p8, %p1607_p5 }
  0x34   :  { %1617 = shalt.err (!%p1614_p9)
}
  0x35   :  { %46 = dma.hbm_to_vmem [thread:$0]  %s1841_s2, 192, %s44_s17, [#allocation6]  }
  0x36   :  { %s1618_s7 = scalar_lea.hbm %s1842_s3, 192 }
  0x37   :  { %p1619_p10 = scmp.ne.s32.totalorder %s1842_s3, %s1618_s7  ;;  %p1622_p11 = scmp.lt.u32.totalorder %s1618_s7, %s1842_s3 }
  0x39   :  { %p1624_p12 = pnand %p1622_p11, %p1619_p10 }
  0x3b   :  { %1627 = shalt.err (!%p1624_p12)
}
  0x3c   :  { %s1628_s12 = scalar_lea.vmem %s54_s19, 192  ;;  %p1633_p0 = scmp.lt.s32.totalorder %s54_s19, %s54_s19 }
  0x3d   :  { %p1629_p13 = scmp.ne.s32.totalorder %s54_s19, %s1628_s12  ;;  %p1634_p1 = scmp.lt.s32.totalorder %s1628_s12, %s1628_s12 }
  0x3f   :  { %p1635_p2 = por %p1634_p1, %p1633_p0 }
  0x41   :  { %p1636_p3 = pnand %p1635_p2, %p1629_p13 }
  0x43   :  { %1639 = shalt.err (!%p1636_p3)
}
  0x44   :  { %56 = dma.hbm_to_vmem [thread:$0]  %s1842_s3, 192, %s54_s19, [#allocation9]  }
  0x45   :  { %1662 = dma.done.wait [#allocation3], 256  }
  0x46   :  { %1663 = vsyncadd [#allocation3], 4294967040 }
  0x47   :  { %1664 = dma.done.wait [#allocation6], 12480  }
  0x48   :  { %1665 = vsyncadd [#allocation6], 4294954816 }
  0x49   :  { %1666 = dma.done.wait [#allocation9], 192  }
  0x4a   :  { %1667 = vsyncadd [#allocation9], 4294967104  ;;  %v1678_v0 = vmov 0   ;;  %v1408_v1 = vld [vmem:[#allocation5 + $0x4] ss:$48 sps:$4 sm:$0xff]   ;;  %v71_v28 = vld [vmem:[#allocation2 + $0x8] sm:$0xff] }
  0x4b   :  { %687 = vmatprep.mubr.bf16.mxu0 %v1678_v0  ;;  %730 = vmatprep.mubr.bf16.mxu1 %v1678_v0  ;;  %v1410_v2 = vld [vmem:[#allocation5 + $0xc] ss:$48 sps:$4 sm:$0xff]   ;;  %v1412_v3 = vld [vmem:[#allocation5] ss:$48 sps:$4 sm:$0xff]   ;;  %v1413_v4 = vld [vmem:[#allocation5 + $0x8] ss:$48 sps:$4 sm:$0xff]  }
  0x4c   :  { %655 = vmatprep.subr.bf16.mxu0 %v1408_v1  ;;  %698 = vmatprep.subr.bf16.mxu1 %v1410_v2  ;;  %v1414_v5 = vld [vmem:[#allocation5 + $0x64] ss:$48 sps:$4 sm:$0xff]   ;;  %v1416_v6 = vld [vmem:[#allocation5 + $0x6c] ss:$48 sps:$4 sm:$0xff]   ;;  %v1418_v7 = vld [vmem:[#allocation5 + $0x60] ss:$48 sps:$4 sm:$0xff]  }
  0x4d   :  { %656 = vmatpush1.bf16.msra.mxu0 %v1412_v3  ;;  %699 = vmatpush1.bf16.msra.mxu1 %v1413_v4  ;;  %v1419_v8 = vld [vmem:[#allocation5 + $0x68] ss:$48 sps:$4 sm:$0xff]   ;;  %v1420_v9 = vld [vmem:[#allocation5 + $0xc4] ss:$48 sps:$4 sm:$0xff]   ;;  %v1422_v10 = vld [vmem:[#allocation5 + $0xcc] ss:$48 sps:$4 sm:$0xff]  }
  0x4e   :  { %657 = vmatprep.subr.bf16.mxu0 %v1414_v5  ;;  %700 = vmatprep.subr.bf16.mxu1 %v1416_v6  ;;  %v1424_v11 = vld [vmem:[#allocation5 + $0xc0] ss:$48 sps:$4 sm:$0xff]   ;;  %v1425_v12 = vld [vmem:[#allocation5 + $0xc8] ss:$48 sps:$4 sm:$0xff]   ;;  %v1426_v13 = vld [vmem:[#allocation5 + $0x124] ss:$48 sps:$4 sm:$0xff]  }
  0x4f   :  { %v1428_v14 = vld [vmem:[#allocation5 + $0x12c] ss:$48 sps:$4 sm:$0xff]   ;;  %v1430_v15 = vld [vmem:[#allocation5 + $0x120] ss:$48 sps:$4 sm:$0xff]   ;;  %v1431_v16 = vld [vmem:[#allocation5 + $0x128] ss:$48 sps:$4 sm:$0xff]  }
  0x50   :  { %v1432_v17 = vld [vmem:[#allocation5 + $0x184] ss:$48 sps:$4 sm:$0xff]   ;;  %v1434_v18 = vld [vmem:[#allocation5 + $0x18c] ss:$48 sps:$4 sm:$0xff]   ;;  %v1436_v19 = vld [vmem:[#allocation5 + $0x180] ss:$48 sps:$4 sm:$0xff]  }
  0x51   :  { %658 = vmatpush1.bf16.msra.mxu0 %v1418_v7  ;;  %701 = vmatpush1.bf16.msra.mxu1 %v1419_v8  ;;  %v1437_v20 = vld [vmem:[#allocation5 + $0x188] ss:$48 sps:$4 sm:$0xff]   ;;  %v1438_v21 = vld [vmem:[#allocation5 + $0x1e4] ss:$48 sps:$4 sm:$0xff]   ;;  %v1440_v22 = vld [vmem:[#allocation5 + $0x1ec] ss:$48 sps:$4 sm:$0xff]  }
  0x52   :  { %659 = vmatprep.subr.bf16.mxu0 %v1420_v9  ;;  %702 = vmatprep.subr.bf16.mxu1 %v1422_v10  ;;  %v1442_v23 = vld [vmem:[#allocation5 + $0x1e0] ss:$48 sps:$4 sm:$0xff]   ;;  %v1443_v24 = vld [vmem:[#allocation5 + $0x1e8] ss:$48 sps:$4 sm:$0xff]   ;;  %v1444_v25 = vld [vmem:[#allocation5 + $0x244] ss:$48 sps:$4 sm:$0xff]  }
  0x53   :  { %v1446_v26 = vld [vmem:[#allocation5 + $0x24c] ss:$48 sps:$4 sm:$0xff]   ;;  %v70_v27 = vld [vmem:[#allocation2] sm:$0xff]  ;;  %v73_v30 = vmul.f32 255.0, %v71_v28  ;;  %v1449_v32 = vld [vmem:[#allocation5 + $0x248] ss:$48 sps:$4 sm:$0xff]  }
  0x54   :  { %v72_v29 = vmul.f32 255.0, %v70_v27  ;;  %v1448_v31 = vld [vmem:[#allocation5 + $0x240] ss:$48 sps:$4 sm:$0xff]   ;;  %v1450_v35 = vld [vmem:[#allocation5 + $0x2a4] ss:$48 sps:$4 sm:$0xff]   ;;  %s1679_s3 = smov [#allocation10]  }
  0x55   :  { %660 = vmatpush1.bf16.msra.mxu0 %v1424_v11  ;;  %703 = vmatpush1.bf16.msra.mxu1 %v1425_v12  ;;  %v1348_v34 = vtrunc.f32 %v73_v30  ;;  %v1452_v36 = vld [vmem:[#allocation5 + $0x2ac] ss:$48 sps:$4 sm:$0xff]   ;;  %v1454_v39 = vld [vmem:[#allocation5 + $0x2a0] ss:$48 sps:$4 sm:$0xff]   ;;  %v1455_v40 = vld [vmem:[#allocation5 + $0x2a8] ss:$48 sps:$4 sm:$0xff]  }
  0x56   :  { %661 = vmatprep.subr.bf16.mxu0 %v1426_v13  ;;  %704 = vmatprep.subr.bf16.mxu1 %v1428_v14  ;;  %v1346_v33 = vtrunc.f32 %v72_v29  ;;  %v1458_v43 = vld [vmem:[#allocation5 + $0x14] ss:$48 sps:$4 sm:$0xff]   ;;  %v1461_v44 = vld [vmem:[#allocation5 + $0x1c] ss:$48 sps:$4 sm:$0xff]   ;;  %v1456_v46 = vld [vmem:[#allocation5 + $0x10] ss:$48 sps:$4 sm:$0xff]  }
  0x57   :  { %v1349_v38 = vcvt.f32.s32 %v1348_v34  ;;  %v1459_v47 = vld [vmem:[#allocation5 + $0x18] ss:$48 sps:$4 sm:$0xff]   ;;  %v1464_v48 = vld [vmem:[#allocation5 + $0x74] ss:$48 sps:$4 sm:$0xff]   ;;  %v1467_v49 = vld [vmem:[#allocation5 + $0x7c] ss:$48 sps:$4 sm:$0xff]  }
  0x58   :  { %v1347_v37 = vcvt.f32.s32 %v1346_v33  ;;  %v1462_v50 = vld [vmem:[#allocation5 + $0x70] ss:$48 sps:$4 sm:$0xff]   ;;  %v1465_v51 = vld [vmem:[#allocation5 + $0x78] ss:$48 sps:$4 sm:$0xff]   ;;  %v1470_v52 = vld [vmem:[#allocation5 + $0xd4] ss:$48 sps:$4 sm:$0xff]  }
  0x59   :  { %662 = vmatpush1.bf16.msra.mxu0 %v1430_v15  ;;  %705 = vmatpush1.bf16.msra.mxu1 %v1431_v16  ;;  %v77_v42 = vcvt.s32.f32 %v1349_v38  ;;  %v1473_v53 = vld [vmem:[#allocation5 + $0xdc] ss:$48 sps:$4 sm:$0xff]   ;;  %v1468_v54 = vld [vmem:[#allocation5 + $0xd0] ss:$48 sps:$4 sm:$0xff]   ;;  %v1471_v55 = vld [vmem:[#allocation5 + $0xd8] ss:$48 sps:$4 sm:$0xff]  }
  0x5a   :  { %663 = vmatprep.subr.bf16.mxu0 %v1432_v17  ;;  %706 = vmatprep.subr.bf16.mxu1 %v1434_v18  ;;  %v76_v41 = vcvt.s32.f32 %v1347_v37  ;;  %v1476_v56 = vld [vmem:[#allocation5 + $0x134] ss:$48 sps:$4 sm:$0xff]   ;;  %v1479_v57 = vld [vmem:[#allocation5 + $0x13c] ss:$48 sps:$4 sm:$0xff]   ;;  %v1474_v58 = vld [vmem:[#allocation5 + $0x130] ss:$48 sps:$4 sm:$0xff]  }
  0x5b   :  { %v1477_v59 = vld [vmem:[#allocation5 + $0x138] ss:$48 sps:$4 sm:$0xff]   ;;  %v1482_v60 = vld [vmem:[#allocation5 + $0x194] ss:$48 sps:$4 sm:$0xff]   ;;  %v1485_v61 = vld [vmem:[#allocation5 + $0x19c] ss:$48 sps:$4 sm:$0xff]  }
  0x5c   :  { %v1758_v45 = vpack.c.bf16 %v77_v42, %v76_v41  ;;  %v1480_v62 = vld [vmem:[#allocation5 + $0x190] ss:$48 sps:$4 sm:$0xff]   ;;  %v1483_v63 = vld [vmem:[#allocation5 + $0x198] ss:$48 sps:$4 sm:$0xff]   ;;  %v1488_v1 = vld [vmem:[#allocation5 + $0x1f4] ss:$48 sps:$4 sm:$0xff]  }
  0x5d   :  { %664 = vmatpush1.bf16.msra.mxu0 %v1436_v19  ;;  %707 = vmatpush1.bf16.msra.mxu1 %v1437_v20  ;;  %v1491_v2 = vld [vmem:[#allocation5 + $0x1fc] ss:$48 sps:$4 sm:$0xff]   ;;  %v1486_v3 = vld [vmem:[#allocation5 + $0x1f0] ss:$48 sps:$4 sm:$0xff]   ;;  %v1489_v4 = vld [vmem:[#allocation5 + $0x1f8] ss:$48 sps:$4 sm:$0xff]  }
  0x5e   :  { %665 = vmatprep.subr.bf16.mxu0 %v1438_v21  ;;  %708 = vmatprep.subr.bf16.mxu1 %v1440_v22  ;;  %v1494_v5 = vld [vmem:[#allocation5 + $0x254] ss:$48 sps:$4 sm:$0xff]   ;;  %v1497_v6 = vld [vmem:[#allocation5 + $0x25c] ss:$48 sps:$4 sm:$0xff]   ;;  %v1492_v7 = vld [vmem:[#allocation5 + $0x250] ss:$48 sps:$4 sm:$0xff]  }
  0x5f   :  { %v1495_v8 = vld [vmem:[#allocation5 + $0x258] ss:$48 sps:$4 sm:$0xff]   ;;  %v1500_v9 = vld [vmem:[#allocation5 + $0x2b4] ss:$48 sps:$4 sm:$0xff]   ;;  %v1503_v10 = vld [vmem:[#allocation5 + $0x2bc] ss:$48 sps:$4 sm:$0xff]  }
  0x60   :  { %v1498_v11 = vld [vmem:[#allocation5 + $0x2b0] ss:$48 sps:$4 sm:$0xff]   ;;  %v1501_v12 = vld [vmem:[#allocation5 + $0x2b8] ss:$48 sps:$4 sm:$0xff]   ;;  %v1506_v13 = vld [vmem:[#allocation5 + $0x24] ss:$48 sps:$4 sm:$0xff]  }
  0x61   :  { %666 = vmatpush1.bf16.msra.mxu0 %v1442_v23  ;;  %709 = vmatpush1.bf16.msra.mxu1 %v1443_v24  ;;  %v1509_v14 = vld [vmem:[#allocation5 + $0x2c] ss:$48 sps:$4 sm:$0xff]   ;;  %v1504_v15 = vld [vmem:[#allocation5 + $0x20] ss:$48 sps:$4 sm:$0xff]   ;;  %v1507_v16 = vld [vmem:[#allocation5 + $0x28] ss:$48 sps:$4 sm:$0xff]  }
  0x62   :  { %667 = vmatprep.subr.bf16.mxu0 %v1444_v25  ;;  %710 = vmatprep.subr.bf16.mxu1 %v1446_v26  ;;  %v1512_v17 = vld [vmem:[#allocation5 + $0x84] ss:$48 sps:$4 sm:$0xff]   ;;  %v1515_v18 = vld [vmem:[#allocation5 + $0x8c] ss:$48 sps:$4 sm:$0xff]   ;;  %v1510_v19 = vld [vmem:[#allocation5 + $0x80] ss:$48 sps:$4 sm:$0xff]  }
  0x63   :  { %v1513_v20 = vld [vmem:[#allocation5 + $0x88] ss:$48 sps:$4 sm:$0xff]   ;;  %v1518_v21 = vld [vmem:[#allocation5 + $0xe4] ss:$48 sps:$4 sm:$0xff]   ;;  %v1521_v22 = vld [vmem:[#allocation5 + $0xec] ss:$48 sps:$4 sm:$0xff]  }
  0x64   :  { %v1516_v23 = vld [vmem:[#allocation5 + $0xe0] ss:$48 sps:$4 sm:$0xff]   ;;  %v1519_v24 = vld [vmem:[#allocation5 + $0xe8] ss:$48 sps:$4 sm:$0xff]   ;;  %v1524_v25 = vld [vmem:[#allocation5 + $0x144] ss:$48 sps:$4 sm:$0xff]  }
  0x65   :  { %668 = vmatpush1.bf16.msra.mxu0 %v1448_v31  ;;  %711 = vmatpush1.bf16.msra.mxu1 %v1449_v32  ;;  %v1527_v26 = vld [vmem:[#allocation5 + $0x14c] ss:$48 sps:$4 sm:$0xff]   ;;  %v1522_v27 = vld [vmem:[#allocation5 + $0x140] ss:$48 sps:$4 sm:$0xff]   ;;  %v1525_v28 = vld [vmem:[#allocation5 + $0x148] ss:$48 sps:$4 sm:$0xff]  }
  0x66   :  { %669 = vmatprep.subr.bf16.mxu0 %v1450_v35  ;;  %712 = vmatprep.subr.bf16.mxu1 %v1452_v36  ;;  %v1530_v29 = vld [vmem:[#allocation5 + $0x1a4] ss:$48 sps:$4 sm:$0xff]   ;;  %v1533_v30 = vld [vmem:[#allocation5 + $0x1ac] ss:$48 sps:$4 sm:$0xff]   ;;  %v1528_v31 = vld [vmem:[#allocation5 + $0x1a0] ss:$48 sps:$4 sm:$0xff]  }
  0x67   :  { %v1536_v32 = vld [vmem:[#allocation5 + $0x204] ss:$48 sps:$4 sm:$0xff]   ;;  %v1539_v33 = vld [vmem:[#allocation5 + $0x20c] ss:$48 sps:$4 sm:$0xff]   ;;  %v1534_v34 = vld [vmem:[#allocation5 + $0x200] ss:$48 sps:$4 sm:$0xff]  }
  0x68   :  { %v1537_v35 = vld [vmem:[#allocation5 + $0x208] ss:$48 sps:$4 sm:$0xff]   ;;  %v1542_v36 = vld [vmem:[#allocation5 + $0x264] ss:$48 sps:$4 sm:$0xff]   ;;  %v1545_v37 = vld [vmem:[#allocation5 + $0x26c] ss:$48 sps:$4 sm:$0xff]  }
  0x69   :  { %670 = vmatpush1.bf16.msra.mxu0 %v1454_v39  ;;  %713 = vmatpush1.bf16.msra.mxu1 %v1455_v40  ;;  %v1540_v38 = vld [vmem:[#allocation5 + $0x260] ss:$48 sps:$4 sm:$0xff]   ;;  %v1543_v39 = vld [vmem:[#allocation5 + $0x268] ss:$48 sps:$4 sm:$0xff]   ;;  %v1548_v40 = vld [vmem:[#allocation5 + $0x2c4] ss:$48 sps:$4 sm:$0xff]  }
  0x6a   :  { %741 = vmatprep.subr.bf16.mxu0 %v1458_v43  ;;  %784 = vmatprep.subr.bf16.mxu1 %v1461_v44  ;;  %v1551_v41 = vld [vmem:[#allocation5 + $0x2cc] ss:$48 sps:$4 sm:$0xff]   ;;  %v1546_v42 = vld [vmem:[#allocation5 + $0x2c0] ss:$48 sps:$4 sm:$0xff]   ;;  %v1549_v43 = vld [vmem:[#allocation5 + $0x2c8] ss:$48 sps:$4 sm:$0xff]   ;;  %v939_v44 = vlaneseq }
  0x6b   :  { %s1212_s13 = sshll.u32 %s1679_s3, 4  ;;  %s1213_s13 = int_to_ptr.vmem [resolvable:$true] %s1212_s13 }
  0x6c   :  { %688 = vmatmul.mubr.bf16.vlgmr.msra.gmra.mrb[0].mxu0 %v1758_v45  ;;  %731 = vmatmul.mubr.bf16.vlgmr.msra.gmra.mrb[0].mxu1 %v1758_v45  ;;  %s1640_s14 = scalar_lea.vmem %s1213_s13, 1536  ;;  %p1645_p5 = scmp.lt.s32.totalorder %s1213_s13, %s1213_s13 }
  0x6d   :  { %742 = vmatpush1.bf16.msra.mxu0 %v1456_v46  ;;  %785 = vmatpush1.bf16.msra.mxu1 %v1459_v47  ;;  %v1770_v46 = vshrl.u32 %v939_v44, 7  ;;  %p1641_p4 = scmp.ne.s32.totalorder %s1213_s13, %s1640_s14  ;;  %p1646_p6 = scmp.lt.s32.totalorder %s1640_s14, %s1640_s14 }
  0x6e   :  { %743 = vmatprep.subr.bf16.mxu0 %v1464_v48  ;;  %786 = vmatprep.subr.bf16.mxu1 %v1467_v49 }
  0x6f   :  { %773 = vmatprep.mubr.bf16.mxu0 %v1678_v0  ;;  %816 = vmatprep.mubr.bf16.mxu1 %v1678_v0  ;;  %v1773_v47 = vsub.s32 0, %v1770_v46  ;;  %v1776_v48 = vsub.s32 2, %v1770_v46  ;;  %v1779_v49 = vsub.s32 1, %v1770_v46  ;;  %p1647_p7 = por %p1646_p6, %p1645_p5 }
  0x71   :  { %744 = vmatpush1.bf16.msra.mxu0 %v1462_v50  ;;  %787 = vmatpush1.bf16.msra.mxu1 %v1465_v51  ;;  %v1782_v50 = vsub.s32 3, %v1770_v46  ;;  %v1784_v51 = vld [vmem:[#allocation7] sm:$0xff]  ;;  %p1648_p8 = pnand %p1647_p7, %p1641_p4 }
  0x72   :  { %745 = vmatprep.subr.bf16.mxu0 %v1470_v52  ;;  %788 = vmatprep.subr.bf16.mxu1 %v1473_v53  ;;  %v1786_v52 = vld [vmem:[#allocation8] sm:$0xff]  ;;  %v942_v53 = vrot.slane %v1784_v51, %v1773_v47 }
  0x75   :  { %746 = vmatpush1.bf16.msra.mxu0 %v1468_v54  ;;  %789 = vmatpush1.bf16.msra.mxu1 %v1471_v55  ;;  %v950_v55 = vrot.slane %v1784_v51, %v1776_v48 }
  0x76   :  { %747 = vmatprep.subr.bf16.mxu0 %v1476_v56  ;;  %790 = vmatprep.subr.bf16.mxu1 %v1479_v57  ;;  %v946_v56 = vrot.slane %v1784_v51, %v1779_v49  ;;  %v954_v57 = vrot.slane %v1784_v51, %v1782_v50 }
  0x79   :  { %748 = vmatpush1.bf16.msra.mxu0 %v1474_v58  ;;  %791 = vmatpush1.bf16.msra.mxu1 %v1477_v59  ;;  %v1042_v59 = vrot.slane %v1786_v52, %v1773_v47 }
  0x7a   :  { %749 = vmatprep.subr.bf16.mxu0 %v1482_v60  ;;  %792 = vmatprep.subr.bf16.mxu1 %v1485_v61  ;;  %v1050_v61 = vrot.slane %v1786_v52, %v1776_v48 }
  0x7d   :  { %750 = vmatpush1.bf16.msra.mxu0 %v1480_v62  ;;  %793 = vmatpush1.bf16.msra.mxu1 %v1483_v63 }
  0x7e   :  { %751 = vmatprep.subr.bf16.mxu0 %v1488_v1  ;;  %794 = vmatprep.subr.bf16.mxu1 %v1491_v2  ;;  %v1046_v2 = vrot.slane %v1786_v52, %v1779_v49 }
  0x81   :  { %752 = vmatpush1.bf16.msra.mxu0 %v1486_v3  ;;  %795 = vmatpush1.bf16.msra.mxu1 %v1489_v4  ;;  %v1054_v4 = vrot.slane %v1786_v52, %v1782_v50 }
  0x82   :  { %753 = vmatprep.subr.bf16.mxu0 %v1494_v5  ;;  %796 = vmatprep.subr.bf16.mxu1 %v1497_v6 }
  0x85   :  { %754 = vmatpush1.bf16.msra.mxu0 %v1492_v7  ;;  %797 = vmatpush1.bf16.msra.mxu1 %v1495_v8 }
  0x86   :  { %755 = vmatprep.subr.bf16.mxu0 %v1500_v9  ;;  %798 = vmatprep.subr.bf16.mxu1 %v1503_v10 }
  0x89   :  { %756 = vmatpush1.bf16.msra.mxu0 %v1498_v11  ;;  %799 = vmatpush1.bf16.msra.mxu1 %v1501_v12 }
  0x8a   :  { %827 = vmatprep.subr.bf16.mxu0 %v1506_v13  ;;  %870 = vmatprep.subr.bf16.mxu1 %v1509_v14 }
  0x8c   :  { %774 = vmatmul.mubr.bf16.vlgmr.msra.gmra.mrb[4].mxu0 %v1758_v45  ;;  %817 = vmatmul.mubr.bf16.vlgmr.msra.gmra.mrb[4].mxu1 %v1758_v45 }
  0x8d   :  { %828 = vmatpush1.bf16.msra.mxu0 %v1504_v15  ;;  %871 = vmatpush1.bf16.msra.mxu1 %v1507_v16 }
  0x8e   :  { %829 = vmatprep.subr.bf16.mxu0 %v1512_v17  ;;  %872 = vmatprep.subr.bf16.mxu1 %v1515_v18 }
  0x8f   :  { %859 = vmatprep.mubr.bf16.mxu0 %v1678_v0  ;;  %902 = vmatprep.mubr.bf16.mxu1 %v1678_v0  ;;  %v1531_v0 = vld [vmem:[#allocation5 + $0x1a8] ss:$48 sps:$4 sm:$0xff]  }
  0x91   :  { %830 = vmatpush1.bf16.msra.mxu0 %v1510_v19  ;;  %873 = vmatpush1.bf16.msra.mxu1 %v1513_v20 }
  0x92   :  { %831 = vmatprep.subr.bf16.mxu0 %v1518_v21  ;;  %874 = vmatprep.subr.bf16.mxu1 %v1521_v22 }
  0x95   :  { %832 = vmatpush1.bf16.msra.mxu0 %v1516_v23  ;;  %875 = vmatpush1.bf16.msra.mxu1 %v1519_v24 }
  0x96   :  { %833 = vmatprep.subr.bf16.mxu0 %v1524_v25  ;;  %876 = vmatprep.subr.bf16.mxu1 %v1527_v26 }
  0x99   :  { %834 = vmatpush1.bf16.msra.mxu0 %v1522_v27  ;;  %877 = vmatpush1.bf16.msra.mxu1 %v1525_v28 }
  0x9a   :  { %835 = vmatprep.subr.bf16.mxu0 %v1530_v29  ;;  %878 = vmatprep.subr.bf16.mxu1 %v1533_v30 }
  0x9d   :  { %836 = vmatpush1.bf16.msra.mxu0 %v1528_v31  ;;  %879 = vmatpush1.bf16.msra.mxu1 %v1531_v0 }
  0x9e   :  { %837 = vmatprep.subr.bf16.mxu0 %v1536_v32  ;;  %880 = vmatprep.subr.bf16.mxu1 %v1539_v33 }
  0xa1   :  { %838 = vmatpush1.bf16.msra.mxu0 %v1534_v34  ;;  %881 = vmatpush1.bf16.msra.mxu1 %v1537_v35 }
  0xa2   :  { %839 = vmatprep.subr.bf16.mxu0 %v1542_v36  ;;  %882 = vmatprep.subr.bf16.mxu1 %v1545_v37 }
  0xa5   :  { %840 = vmatpush1.bf16.msra.mxu0 %v1540_v38  ;;  %883 = vmatpush1.bf16.msra.mxu1 %v1543_v39 }
  0xa6   :  { %841 = vmatprep.subr.bf16.mxu0 %v1548_v40  ;;  %884 = vmatprep.subr.bf16.mxu1 %v1551_v41 }
  0xa9   :  { %842 = vmatpush1.bf16.msra.mxu0 %v1546_v42  ;;  %885 = vmatpush1.bf16.msra.mxu1 %v1549_v43 }
  0xac   :  { %860 = vmatmul.mubr.bf16.vlgmr.msra.gmra.mrb[8].mxu0 %v1758_v45  ;;  %903 = vmatmul.mubr.bf16.vlgmr.msra.gmra.mrb[8].mxu1 %v1758_v45 }
 0x13f   :  { %v689_v45 = vpop.f32.mrb[0].mxu0  ;;  %v732_v54 = vpop.f32.mrb[0].mxu1 }
 0x140   :  { %v1350_v58 = vtrunc.f32 %v689_v45  ;;  %v1354_v60 = vtrunc.f32 %v732_v54  ;;  %v691_v62 = vpop.f32.mrb[1].mxu0  ;;  %v734_v63 = vpop.f32.mrb[1].mxu1 }
 0x141   :  { %v1352_v1 = vtrunc.f32 %v691_v62  ;;  %v1356_v3 = vtrunc.f32 %v734_v63  ;;  %v693_v5 = vpop.f32.mrb[2].mxu0  ;;  %v736_v6 = vpop.f32.mrb[2].mxu1 }
 0x142   :  { %v1351_v7 = vcvt.f32.s32 %v1350_v58  ;;  %v1355_v8 = vcvt.f32.s32 %v1354_v60  ;;  %v1374_v9 = vtrunc.f32 %v693_v5  ;;  %v1378_v10 = vtrunc.f32 %v736_v6  ;;  %v695_v11 = vpop.f32.mrb[3].mxu0  ;;  %v738_v12 = vpop.f32.mrb[3].mxu1 }
 0x143   :  { %v1353_v13 = vcvt.f32.s32 %v1352_v1  ;;  %v1357_v14 = vcvt.f32.s32 %v1356_v3  ;;  %v1376_v15 = vtrunc.f32 %v695_v11  ;;  %v1380_v16 = vtrunc.f32 %v738_v12 }
 0x144   :  { %v987_v17 = vand.u32 %v1351_v7, %v942_v53  ;;  %v989_v18 = vand.u32 %v1355_v8, %v950_v55  ;;  %v1375_v19 = vcvt.f32.s32 %v1374_v9  ;;  %v1379_v20 = vcvt.f32.s32 %v1378_v10 }
 0x145   :  { %v988_v21 = vand.u32 %v1353_v13, %v946_v56  ;;  %v990_v22 = vand.u32 %v1357_v14, %v954_v57  ;;  %v1377_v23 = vcvt.f32.s32 %v1376_v15  ;;  %v1381_v24 = vcvt.f32.s32 %v1380_v16 }
 0x146   :  { %v1011_v25 = vcvt.s32.f32 %v987_v17  ;;  %v1013_v26 = vcvt.s32.f32 %v989_v18  ;;  %v999_v27 = vand.u32 %v1375_v19, %v942_v53  ;;  %v1001_v28 = vand.u32 %v1379_v20, %v950_v55 }
 0x147   :  { %v1012_v29 = vcvt.s32.f32 %v988_v21  ;;  %v1014_v30 = vcvt.s32.f32 %v990_v22  ;;  %v1000_v31 = vand.u32 %v1377_v23, %v946_v56  ;;  %v1002_v0 = vand.u32 %v1381_v24, %v954_v57 }
 0x148   :  { %v1099_v32 = vmul.f32 %v1042_v59, %v1011_v25  ;;  %v1101_v33 = vmul.f32 %v1050_v61, %v1013_v26  ;;  %v1023_v34 = vcvt.s32.f32 %v999_v27  ;;  %v1025_v35 = vcvt.s32.f32 %v1001_v28 }
 0x149   :  { %v1100_v36 = vmul.f32 %v1046_v2, %v1012_v29  ;;  %v1102_v37 = vmul.f32 %v1054_v4, %v1014_v30  ;;  %v1024_v38 = vcvt.s32.f32 %v1000_v31  ;;  %v1026_v39 = vcvt.s32.f32 %v1002_v0 }
 0x14a   :  { %v1111_v40 = vmul.f32 %v1042_v59, %v1023_v34  ;;  %v1113_v41 = vmul.f32 %v1050_v61, %v1025_v35  ;;  %v957_v55 = vsub.s32 4, %v1770_v46  ;;  %v965_v56 = vsub.s32 6, %v1770_v46 }
 0x14b   :  { %v1334_v42 = vpack.c.bf16 %v1100_v36, %v1099_v32  ;;  %v1335_v43 = vpack.c.bf16 %v1102_v37, %v1101_v33  ;;  %v1112_v44 = vmul.f32 %v1046_v2, %v1024_v38  ;;  %v1114_v45 = vmul.f32 %v1054_v4, %v1026_v39 }
 0x14c   :  { %v961_v57 = vsub.s32 5, %v1770_v46  ;;  %v969_v58 = vsub.s32 7, %v1770_v46  ;;  %v958_v60 = vrot.slane %v1784_v51, %v957_v55  ;;  %v966_v62 = vrot.slane %v1784_v51, %v965_v56 }
 0x14d   :  { %1195 = vst [vmem:[#allocation10] sm:$0xff] %v1334_v42  ;;  %1196 = vst [vmem:[#allocation10 + $0x8] sm:$0xff] %v1335_v43  ;;  %v1340_v53 = vpack.c.bf16 %v1112_v44, %v1111_v40  ;;  %v1341_v54 = vpack.c.bf16 %v1114_v45, %v1113_v41  ;;  %v1058_v3 = vrot.slane %v1786_v52, %v957_v55 }
 0x14e   :  { %v962_v63 = vrot.slane %v1784_v51, %v961_v57  ;;  %v970_v1 = vrot.slane %v1784_v51, %v969_v58  ;;  %v1066_v5 = vrot.slane %v1786_v52, %v965_v56  ;;  %v1062_v46 = vrot.slane %v1786_v52, %v961_v57 }
 0x14f   :  { %1201 = vst [vmem:[#allocation10 + $0x30] sm:$0xff] %v1340_v53  ;;  %1202 = vst [vmem:[#allocation10 + $0x38] sm:$0xff] %v1341_v54  ;;  %v1070_v10 = vrot.slane %v1786_v52, %v969_v58 }
 0x15f   :  { %v775_v59 = vpop.f32.mrb[4].mxu0  ;;  %v818_v61 = vpop.f32.mrb[4].mxu1 }
 0x160   :  { %v1358_v2 = vtrunc.f32 %v775_v59  ;;  %v1362_v4 = vtrunc.f32 %v818_v61  ;;  %v777_v6 = vpop.f32.mrb[5].mxu0  ;;  %v820_v7 = vpop.f32.mrb[5].mxu1  ;;  %v938_v59 = vld [vmem:[#allocation7 + $0x8] sm:$0xf] }
 0x161   :  { %v1360_v8 = vtrunc.f32 %v777_v6  ;;  %v1364_v9 = vtrunc.f32 %v820_v7  ;;  %v779_v11 = vpop.f32.mrb[6].mxu0  ;;  %v822_v12 = vpop.f32.mrb[6].mxu1 }
 0x162   :  { %v1359_v13 = vcvt.f32.s32 %v1358_v2  ;;  %v1363_v14 = vcvt.f32.s32 %v1362_v4  ;;  %v1382_v15 = vtrunc.f32 %v779_v11  ;;  %v1386_v51 = vtrunc.f32 %v822_v12  ;;  %v781_v16 = vpop.f32.mrb[7].mxu0  ;;  %v824_v17 = vpop.f32.mrb[7].mxu1 }
 0x163   :  { %v1361_v18 = vcvt.f32.s32 %v1360_v8  ;;  %v1365_v19 = vcvt.f32.s32 %v1364_v9  ;;  %v1384_v20 = vtrunc.f32 %v781_v16  ;;  %v1388_v21 = vtrunc.f32 %v824_v17 }
 0x164   :  { %v991_v22 = vand.u32 %v1359_v13, %v958_v60  ;;  %v993_v23 = vand.u32 %v1363_v14, %v966_v62  ;;  %v1383_v24 = vcvt.f32.s32 %v1382_v15  ;;  %v1387_v25 = vcvt.f32.s32 %v1386_v51 }
 0x165   :  { %v992_v26 = vand.u32 %v1361_v18, %v962_v63  ;;  %v994_v27 = vand.u32 %v1365_v19, %v970_v1  ;;  %v1385_v28 = vcvt.f32.s32 %v1384_v20  ;;  %v1389_v52 = vcvt.f32.s32 %v1388_v21 }
 0x166   :  { %v1015_v29 = vcvt.s32.f32 %v991_v22  ;;  %v1017_v30 = vcvt.s32.f32 %v993_v23  ;;  %v1003_v31 = vand.u32 %v1383_v24, %v958_v60  ;;  %v1005_v0 = vand.u32 %v1387_v25, %v966_v62  ;;  %v1036_v60 = vld [vmem:[#allocation8 + $0x8] sm:$0xf] }
 0x167   :  { %v1016_v32 = vcvt.s32.f32 %v992_v26  ;;  %v1018_v33 = vcvt.s32.f32 %v994_v27  ;;  %v1004_v34 = vand.u32 %v1385_v28, %v962_v63  ;;  %v1006_v35 = vand.u32 %v1389_v52, %v970_v1 }
 0x168   :  { %v1103_v36 = vmul.f32 %v1058_v3, %v1015_v29  ;;  %v1105_v37 = vmul.f32 %v1066_v5, %v1017_v30  ;;  %v1027_v38 = vcvt.s32.f32 %v1003_v31  ;;  %v1029_v39 = vcvt.s32.f32 %v1005_v0 }
 0x169   :  { %v1104_v40 = vmul.f32 %v1062_v46, %v1016_v32  ;;  %v1106_v41 = vmul.f32 %v1070_v10, %v1018_v33  ;;  %v1028_v42 = vcvt.s32.f32 %v1004_v34  ;;  %v1030_v43 = vcvt.s32.f32 %v1006_v35 }
 0x16a   :  { %v1115_v44 = vmul.f32 %v1058_v3, %v1027_v38  ;;  %v1117_v45 = vmul.f32 %v1066_v5, %v1029_v39  ;;  %v974_v62 = vrot.slane %v938_v59, %v1773_v47  ;;  %v982_v1 = vrot.slane %v938_v59, %v1776_v48 }
 0x16b   :  { %v1336_v53 = vpack.c.bf16 %v1104_v40, %v1103_v36  ;;  %v1337_v54 = vpack.c.bf16 %v1106_v41, %v1105_v37  ;;  %v1116_v55 = vmul.f32 %v1062_v46, %v1028_v42  ;;  %v1118_v56 = vmul.f32 %v1070_v10, %v1030_v43 }
 0x16c   :  { %v978_v2 = vrot.slane %v938_v59, %v1779_v49  ;;  %v986_v3 = vrot.slane %v938_v59, %v1782_v50  ;;  %v1074_v5 = vrot.slane %v1036_v60, %v1773_v47  ;;  %v1082_v7 = vrot.slane %v1036_v60, %v1776_v48 }
 0x16d   :  { %1197 = vst [vmem:[#allocation10 + $0x10] sm:$0xff] %v1336_v53  ;;  %1198 = vst [vmem:[#allocation10 + $0x18] sm:$0xff] %v1337_v54  ;;  %v1342_v57 = vpack.c.bf16 %v1116_v55, %v1115_v44  ;;  %v1343_v58 = vpack.c.bf16 %v1118_v56, %v1117_v45  ;;  %v1078_v10 = vrot.slane %v1036_v60, %v1779_v49 }
 0x16e   :  { %v1086_v12 = vrot.slane %v1036_v60, %v1782_v50 }
 0x16f   :  { %1203 = vst [vmem:[#allocation10 + $0x40] sm:$0xff] %v1342_v57  ;;  %1204 = vst [vmem:[#allocation10 + $0x48] sm:$0xff] %v1343_v58 }
 0x17f   :  { %v861_v61 = vpop.f32.mrb[8].mxu0  ;;  %v904_v63 = vpop.f32.mrb[8].mxu1 }
 0x180   :  { %v1366_v4 = vtrunc.f32 %v861_v61  ;;  %v1370_v6 = vtrunc.f32 %v904_v63  ;;  %v863_v8 = vpop.f32.mrb[9].mxu0  ;;  %v906_v46 = vpop.f32.mrb[9].mxu1 }
 0x181   :  { %v1368_v9 = vtrunc.f32 %v863_v8  ;;  %v1372_v11 = vtrunc.f32 %v906_v46  ;;  %v865_v13 = vpop.f32.mrb[10].mxu0  ;;  %v908_v14 = vpop.f32.mrb[10].mxu1 }
 0x182   :  { %v1367_v15 = vcvt.f32.s32 %v1366_v4  ;;  %v1371_v51 = vcvt.f32.s32 %v1370_v6  ;;  %v1390_v16 = vtrunc.f32 %v865_v13  ;;  %v1394_v17 = vtrunc.f32 %v908_v14  ;;  %v867_v18 = vpop.f32.mrb[11].mxu0  ;;  %v910_v19 = vpop.f32.mrb[11].mxu1 }
 0x183   :  { %v1369_v47 = vcvt.f32.s32 %v1368_v9  ;;  %v1373_v20 = vcvt.f32.s32 %v1372_v11  ;;  %v1392_v21 = vtrunc.f32 %v867_v18  ;;  %v1396_v48 = vtrunc.f32 %v910_v19 }
 0x184   :  { %v995_v22 = vand.u32 %v1367_v15, %v974_v62  ;;  %v997_v23 = vand.u32 %v1371_v51, %v982_v1  ;;  %v1391_v24 = vcvt.f32.s32 %v1390_v16  ;;  %v1395_v25 = vcvt.f32.s32 %v1394_v17 }
 0x185   :  { %v996_v49 = vand.u32 %v1369_v47, %v978_v2  ;;  %v998_v26 = vand.u32 %v1373_v20, %v986_v3  ;;  %v1393_v27 = vcvt.f32.s32 %v1392_v21  ;;  %v1397_v50 = vcvt.f32.s32 %v1396_v48 }
 0x186   :  { %v1019_v28 = vcvt.s32.f32 %v995_v22  ;;  %v1021_v52 = vcvt.s32.f32 %v997_v23  ;;  %v1007_v29 = vand.u32 %v1391_v24, %v974_v62  ;;  %v1009_v30 = vand.u32 %v1395_v25, %v982_v1 }
 0x187   :  { %v1020_v31 = vcvt.s32.f32 %v996_v49  ;;  %v1022_v0 = vcvt.s32.f32 %v998_v26  ;;  %v1008_v32 = vand.u32 %v1393_v27, %v978_v2  ;;  %v1010_v33 = vand.u32 %v1397_v50, %v986_v3 }
 0x188   :  { %v1107_v34 = vmul.f32 %v1074_v5, %v1019_v28  ;;  %v1109_v35 = vmul.f32 %v1082_v7, %v1021_v52  ;;  %v1031_v36 = vcvt.s32.f32 %v1007_v29  ;;  %v1033_v37 = vcvt.s32.f32 %v1009_v30 }
 0x189   :  { %v1108_v38 = vmul.f32 %v1078_v10, %v1020_v31  ;;  %v1110_v39 = vmul.f32 %v1086_v12, %v1022_v0  ;;  %v1032_v40 = vcvt.s32.f32 %v1008_v32  ;;  %v1034_v41 = vcvt.s32.f32 %v1010_v33 }
 0x18a   :  { %v1119_v42 = vmul.f32 %v1074_v5, %v1031_v36  ;;  %v1121_v43 = vmul.f32 %v1082_v7, %v1033_v37 }
 0x18b   :  { %v1338_v44 = vpack.c.bf16 %v1108_v38, %v1107_v34  ;;  %v1339_v45 = vpack.c.bf16 %v1110_v39, %v1109_v35  ;;  %v1120_v53 = vmul.f32 %v1078_v10, %v1032_v40  ;;  %v1122_v54 = vmul.f32 %v1086_v12, %v1034_v41 }
 0x18d   :  { %1199 = vst [vmem:[#allocation10 + $0x20] sm:$0xff] %v1338_v44  ;;  %1200 = vst [vmem:[#allocation10 + $0x28] sm:$0xff] %v1339_v45  ;;  %v1344_v55 = vpack.c.bf16 %v1120_v53, %v1119_v42  ;;  %v1345_v56 = vpack.c.bf16 %v1122_v54, %v1121_v43 }
 0x18f   :  { %1205 = vst [vmem:[#allocation10 + $0x50] sm:$0xff] %v1344_v55  ;;  %1206 = vst [vmem:[#allocation10 + $0x58] sm:$0xff] %v1345_v56 }
 0x190   :  { %1651 = shalt.err (!%p1648_p8)
}
 0x191   :  { %s1652_s17 = scalar_lea.hbm %s1843_s4, 1536 }
 0x192   :  { %p1653_p9 = scmp.ne.s32.totalorder %s1843_s4, %s1652_s17  ;;  %p1656_p10 = scmp.lt.u32.totalorder %s1652_s17, %s1843_s4 }
 0x194   :  { %p1658_p11 = pnand %p1656_p10, %p1653_p9 }
 0x196   :  { %1661 = shalt.err (!%p1658_p11)
}
 0x197   :  { %1218 = dma.vmem_to_hbm [thread:$0]  %s1213_s13, 1536, %s1843_s4, [#allocation4], %s1671_s25, %s1671_s25, %s1672_s26  }
 0x198   :  { %1668 = dma.done.wait [#allocation4], 1536  }
 0x199   :  { %1669 = vsyncadd [#allocation4], 4294965760 }
 0x19a   :  { %1222 = vsyncpa [#allocation3], 1 }
 0x19b   :  { %1223 = vsyncpa [#allocation6], 1 }
 0x19c   :  { %1224 = vsyncpa [#allocation9], 1 }
 0x19d   :  { %1225 = vsyncpa [#allocation4], 1 }

</bundles_post_ra>
